<compile_context>
chip_gen: v5e
topology: v5e:2x2
jax: 0.10.0
libtpu: 0.0.40
codegen_flags: <defaults>
</compile_context>

<pallas_src>
import functools
import math

import jax
import jax.numpy as jnp
from jax.experimental import pallas as pl
from jax.experimental.pallas import tpu as pltpu

LEAKY_SLOPE = 0.01  # PyTorch nn.LeakyReLU default negative_slope
_LANE = 128         # lane width: feature dims padded to a multiple of this
_SUBLANE = 8        # f32 sublane granularity for the batch tile


def _round_up(x, m):
    return (x + m - 1) // m * m


# ---------------------------------------------------------------------------
# Fused-MLP kernel: one batch tile, all layers, activation kept in vregs/VMEM.
# ---------------------------------------------------------------------------
def _fused_mlp_kernel(*refs, n_layers: int):
    # refs = (x_ref, w0, b0, w1, b1, ..., out_ref)
    x_ref, out_ref = refs[0], refs[-1]
    wb = refs[1:-1]

    h = x_ref[...]                                           # bf16 [tb, d0_p]
    for li in range(n_layers):
        w = wb[2 * li][...]                                  # bf16 [din_p, dout_p]
        b = wb[2 * li + 1][...]                              # f32  [1, dout_p]
        y = jnp.dot(h.astype(jnp.bfloat16), w,
                    preferred_element_type=jnp.float32)      # MXU, f32 accumulation
        y = y + b                                            # f32 epilogue on VPU
        if li < n_layers - 1:                                # hidden layers only
            y = jnp.where(y >= 0, y, LEAKY_SLOPE * y)        # LeakyReLU
        h = y
    out_ref[...] = h.astype(out_ref.dtype)


# ---------------------------------------------------------------------------
# Wrapper: pad to lane-dense shapes, tile batch, single pallas_call.
# ---------------------------------------------------------------------------
def mlp_forward(params, x, *, tb: int = 512):
    B, dim_in = x.shape
    n_layers = len(params)
    dims = [dim_in] + [w.shape[1] for (w, _) in params]
    dims_p = [_round_up(d, _LANE) for d in dims]

    # Resident-weight design: fine for MLP-sized layers (here ~128x128 bf16 each).
    # For very large hidden dims, switch to K/N tiling with a VMEM accumulator
    # so it also fits v7x's 64 MiB VMEM.
    w_bytes = sum(dims_p[i] * dims_p[i + 1] * 2 for i in range(n_layers))
    assert w_bytes < 8 * 1024 * 1024, "weights too large for VMEM-resident design"

    # Batch tile: multiple of 8 sublanes, capped by the (padded) batch size.
    tb = max(_SUBLANE, _round_up(min(tb, _round_up(B, _SUBLANE)), _SUBLANE))
    B_p = _round_up(B, tb)

    # Pad + cast input: bf16 operands, lane-dense last dim, zero-padded rows/cols.
    x_p = jnp.zeros((B_p, dims_p[0]), jnp.bfloat16)
    x_p = x_p.at[:B, :dim_in].set(x.astype(jnp.bfloat16))

    flat_inputs = [x_p]
    in_specs = [pl.BlockSpec((tb, dims_p[0]), lambda i: (i, 0))]
    for li, (w, b) in enumerate(params):
        din_p, dout_p = dims_p[li], dims_p[li + 1]
        w_p = jnp.zeros((din_p, dout_p), jnp.bfloat16)
        w_p = w_p.at[: w.shape[0], : w.shape[1]].set(w.astype(jnp.bfloat16))
        b_p = jnp.zeros((1, dout_p), jnp.float32)
        b_p = b_p.at[0, : b.shape[0]].set(b.astype(jnp.float32))
        flat_inputs += [w_p, b_p]
        in_specs += [
            pl.BlockSpec((din_p, dout_p), lambda i: (0, 0)),  # VMEM-resident weight
            pl.BlockSpec((1, dout_p), lambda i: (0, 0)),      # VMEM-resident bias
        ]

    flops = 2 * B_p * sum(dims_p[i] * dims_p[i + 1] for i in range(n_layers))
    bytes_accessed = (
        x_p.size * 2
        + sum(int(a.size) * a.dtype.itemsize for a in flat_inputs[1:])
        + B_p * dims_p[-1] * 4
    )

    out_p = pl.pallas_call(
        functools.partial(_fused_mlp_kernel, n_layers=n_layers),
        out_shape=jax.ShapeDtypeStruct((B_p, dims_p[-1]), jnp.float32),
        grid=(B_p // tb,),
        in_specs=in_specs,
        out_specs=pl.BlockSpec((tb, dims_p[-1]), lambda i: (i, 0)),
        compiler_params=pltpu.CompilerParams(
            dimension_semantics=("parallel",),   # megacore sharding on v7x
        ),
        cost_estimate=pl.CostEstimate(
            flops=int(flops), transcendentals=0, bytes_accessed=int(bytes_accessed)
        ),
    )(*flat_inputs)

    return out_p[:B, : dims[-1]]


# ---------------------------------------------------------------------------
# Parameter init (matches torch: bias.zero_, kaiming_uniform_(a=0.01, leaky_relu))
# ---------------------------------------------------------------------------
def _kaiming_uniform(key, fan_in, fan_out, a=0.01, dtype=jnp.float32):
    gain = math.sqrt(2.0 / (1.0 + a * a))
    bound = gain * math.sqrt(3.0 / fan_in)
    # stored as [fan_in, fan_out] (transposed from PyTorch's [out, in])
    return jax.random.uniform(
        key, (fan_in, fan_out), dtype=dtype, minval=-bound, maxval=bound
    )


def init_mlp_params(key, dim_in, dim_out, n_hid_layers=1, dim_hid=128):
    dims = [dim_in] + [dim_hid] * n_hid_layers + [dim_out]
    params = []
    for i in range(len(dims) - 1):
        key, sub = jax.random.split(key)
        w = _kaiming_uniform(sub, dims[i], dims[i + 1])
        b = jnp.zeros((dims[i + 1],), dtype=jnp.float32)
        params.append((w, b))
    return params


# ---------------------------------------------------------------------------
# Pure-JAX references
# ---------------------------------------------------------------------------
def mlp_reference_bf16(params, x):
    """Same numerics as the kernel: bf16 matmul operands, f32 accumulation/epilogue."""
    h = x.astype(jnp.bfloat16)
    n = len(params)
    for li, (w, b) in enumerate(params):
        y = jnp.dot(h.astype(jnp.bfloat16), w.astype(jnp.bfloat16),
                    preferred_element_type=jnp.float32) + b
        if li < n - 1:
            y = jnp.where(y >= 0, y, LEAKY_SLOPE * y)
        h = y
    return h


def mlp_reference_f32(params, x):
    h = x
    n = len(params)
    for li, (w, b) in enumerate(params):
        y = h @ w + b
        if li < n - 1:
            y = jnp.where(y >= 0, y, LEAKY_SLOPE * y)
        h = y
    return h


if __name__ == "__main__":
    dim_in, dim_out, n_hid_layers, dim_hid = 32, 16, 2, 128
    batch = 200  # deliberately NOT a multiple of the tile -> exercises padding path

    key = jax.random.PRNGKey(0)
    key, xkey = jax.random.split(key)
    x = jax.random.normal(xkey, (batch, dim_in), dtype=jnp.float32)

    params = init_mlp_params(key, dim_in, dim_out, n_hid_layers, dim_hid)

    out = mlp_forward(params, x, tb=128)   # grid=(2,), two 128-row batch tiles
    out = jax.block_until_ready(out)
    assert out.shape == (batch, dim_out)

    # Exact-semantics check vs a reference using the same bf16/f32 mixed precision.
    ref_bf16 = mlp_reference_bf16(params, x)
    assert jnp.allclose(out, ref_bf16, atol=1e-3, rtol=1e-3), "mismatch vs bf16 reference"

    # Sanity check vs full-f32 math (loose: bf16 matmul operands).
    ref_f32 = mlp_reference_f32(params, x)
    assert jnp.allclose(out, ref_f32, atol=1e-1, rtol=1e-1), "mismatch vs f32 reference"

    print("KERNEL_OK")
</pallas_src>

<mosaic_0001>
module attributes {stable_mosaic.version = 11 : i64} {
  func.func @_fused_mlp_kernel(%arg0: i32, %arg1: memref<128x128xbf16, #tpu.memory_space<vmem>>, %arg2: memref<128x128xbf16, #tpu.memory_space<vmem>>, %arg3: memref<1x128xf32, #tpu.memory_space<vmem>>, %arg4: memref<128x128xbf16, #tpu.memory_space<vmem>>, %arg5: memref<1x128xf32, #tpu.memory_space<vmem>>, %arg6: memref<128x128xbf16, #tpu.memory_space<vmem>>, %arg7: memref<1x128xf32, #tpu.memory_space<vmem>>, %arg8: memref<128x128xf32, #tpu.memory_space<vmem>>) attributes {dimension_semantics = [#tpu.dimension_semantics<parallel>], iteration_bounds = array<i64: 2>, scalar_prefetch = 0 : i64, scratch_operands = 0 : i64, tpu.core_type = #tpu.core_type<tc>, window_params = [{transform_indices = @transform_0, window_bounds = array<i64: 128, 128>}, {pipeline_mode = #tpu.pipeline_mode<synchronous>, transform_indices = @transform_1, window_bounds = array<i64: 128, 128>}, {pipeline_mode = #tpu.pipeline_mode<synchronous>, transform_indices = @transform_2, window_bounds = array<i64: 1, 128>}, {pipeline_mode = #tpu.pipeline_mode<synchronous>, transform_indices = @transform_3, window_bounds = array<i64: 128, 128>}, {pipeline_mode = #tpu.pipeline_mode<synchronous>, transform_indices = @transform_4, window_bounds = array<i64: 1, 128>}, {pipeline_mode = #tpu.pipeline_mode<synchronous>, transform_indices = @transform_5, window_bounds = array<i64: 128, 128>}, {pipeline_mode = #tpu.pipeline_mode<synchronous>, transform_indices = @transform_6, window_bounds = array<i64: 1, 128>}, {transform_indices = @transform_7, window_bounds = array<i64: 128, 128>}]} {
    %c0 = arith.constant 0 : index
    %c0_0 = arith.constant 0 : index
    %0 = vector.load %arg1[%c0, %c0_0] : memref<128x128xbf16, #tpu.memory_space<vmem>>, vector<128x128xbf16>
    %c0_1 = arith.constant 0 : index
    %c0_2 = arith.constant 0 : index
    %1 = vector.load %arg2[%c0_1, %c0_2] : memref<128x128xbf16, #tpu.memory_space<vmem>>, vector<128x128xbf16>
    %c0_3 = arith.constant 0 : index
    %c0_4 = arith.constant 0 : index
    %2 = vector.load %arg3[%c0_3, %c0_4] : memref<1x128xf32, #tpu.memory_space<vmem>>, vector<1x128xf32>
    %cst = arith.constant dense<0.000000e+00> : vector<128x128xf32>
    %3 = tpu.matmul %0, %1, %cst {dimension_numbers = #tpu.dot_dimension_numbers<[1], [0], [0], [1], [0, 0, 1, 1], [], []>} : vector<128x128xbf16>, vector<128x128xbf16>, vector<128x128xf32> -> vector<128x128xf32>
    %4 = vector.broadcast %2 : vector<1x128xf32> to vector<128x128xf32>
    %5 = arith.addf %3, %4 : vector<128x128xf32>
    %cst_5 = arith.constant 0.000000e+00 : f32
    %6 = vector.broadcast %cst_5 : f32 to vector<128x128xf32>
    %7 = arith.cmpf oge, %5, %6 : vector<128x128xf32>
    %cst_6 = arith.constant 0.00999999977 : f32
    %8 = vector.broadcast %cst_6 : f32 to vector<128x128xf32>
    %9 = arith.mulf %8, %5 : vector<128x128xf32>
    %10 = arith.select %7, %5, %9 : vector<128x128xi1>, vector<128x128xf32>
    %c0_7 = arith.constant 0 : index
    %c0_8 = arith.constant 0 : index
    %11 = vector.load %arg4[%c0_7, %c0_8] : memref<128x128xbf16, #tpu.memory_space<vmem>>, vector<128x128xbf16>
    %c0_9 = arith.constant 0 : index
    %c0_10 = arith.constant 0 : index
    %12 = vector.load %arg5[%c0_9, %c0_10] : memref<1x128xf32, #tpu.memory_space<vmem>>, vector<1x128xf32>
    %13 = arith.truncf %10 : vector<128x128xf32> to vector<128x128xbf16>
    %cst_11 = arith.constant dense<0.000000e+00> : vector<128x128xf32>
    %14 = tpu.matmul %13, %11, %cst_11 {dimension_numbers = #tpu.dot_dimension_numbers<[1], [0], [0], [1], [0, 0, 1, 1], [], []>} : vector<128x128xbf16>, vector<128x128xbf16>, vector<128x128xf32> -> vector<128x128xf32>
    %15 = vector.broadcast %12 : vector<1x128xf32> to vector<128x128xf32>
    %16 = arith.addf %14, %15 : vector<128x128xf32>
    %cst_12 = arith.constant 0.000000e+00 : f32
    %17 = vector.broadcast %cst_12 : f32 to vector<128x128xf32>
    %18 = arith.cmpf oge, %16, %17 : vector<128x128xf32>
    %cst_13 = arith.constant 0.00999999977 : f32
    %19 = vector.broadcast %cst_13 : f32 to vector<128x128xf32>
    %20 = arith.mulf %19, %16 : vector<128x128xf32>
    %21 = arith.select %18, %16, %20 : vector<128x128xi1>, vector<128x128xf32>
    %c0_14 = arith.constant 0 : index
    %c0_15 = arith.constant 0 : index
    %22 = vector.load %arg6[%c0_14, %c0_15] : memref<128x128xbf16, #tpu.memory_space<vmem>>, vector<128x128xbf16>
    %c0_16 = arith.constant 0 : index
    %c0_17 = arith.constant 0 : index
    %23 = vector.load %arg7[%c0_16, %c0_17] : memref<1x128xf32, #tpu.memory_space<vmem>>, vector<1x128xf32>
    %24 = arith.truncf %21 : vector<128x128xf32> to vector<128x128xbf16>
    %cst_18 = arith.constant dense<0.000000e+00> : vector<128x128xf32>
    %25 = tpu.matmul %24, %22, %cst_18 {dimension_numbers = #tpu.dot_dimension_numbers<[1], [0], [0], [1], [0, 0, 1, 1], [], []>} : vector<128x128xbf16>, vector<128x128xbf16>, vector<128x128xf32> -> vector<128x128xf32>
    %26 = vector.broadcast %23 : vector<1x128xf32> to vector<128x128xf32>
    %27 = arith.addf %25, %26 : vector<128x128xf32>
    %c0_19 = arith.constant 0 : index
    %c0_20 = arith.constant 0 : index
    %28 = vector.load %arg8[%c0_19, %c0_20] : memref<128x128xf32, #tpu.memory_space<vmem>>, vector<128x128xf32>
    tpu.vector_store %arg8[%c0_19, %c0_20], %27 {strides = array<i32>} : memref<128x128xf32, #tpu.memory_space<vmem>>, vector<128x128xf32>,
    return
  }
  func.func @transform_0(%arg0: i32) -> (i32, i32) {
    %c0_i32 = arith.constant 0 : i32
    %c0_i32_0 = arith.constant 0 : i32
    return %arg0, %c0_i32 : i32, i32
  }
  func.func @transform_1(%arg0: i32) -> (i32, i32) {
    %c0_i32 = arith.constant 0 : i32
    %c0_i32_0 = arith.constant 0 : i32
    %c0_i32_1 = arith.constant 0 : i32
    return %c0_i32, %c0_i32_0 : i32, i32
  }
  func.func @transform_2(%arg0: i32) -> (i32, i32) {
    %c0_i32 = arith.constant 0 : i32
    %c0_i32_0 = arith.constant 0 : i32
    %c0_i32_1 = arith.constant 0 : i32
    return %c0_i32, %c0_i32_0 : i32, i32
  }
  func.func @transform_3(%arg0: i32) -> (i32, i32) {
    %c0_i32 = arith.constant 0 : i32
    %c0_i32_0 = arith.constant 0 : i32
    %c0_i32_1 = arith.constant 0 : i32
    return %c0_i32, %c0_i32_0 : i32, i32
  }
  func.func @transform_4(%arg0: i32) -> (i32, i32) {
    %c0_i32 = arith.constant 0 : i32
    %c0_i32_0 = arith.constant 0 : i32
    %c0_i32_1 = arith.constant 0 : i32
    return %c0_i32, %c0_i32_0 : i32, i32
  }
  func.func @transform_5(%arg0: i32) -> (i32, i32) {
    %c0_i32 = arith.constant 0 : i32
    %c0_i32_0 = arith.constant 0 : i32
    %c0_i32_1 = arith.constant 0 : i32
    return %c0_i32, %c0_i32_0 : i32, i32
  }
  func.func @transform_6(%arg0: i32) -> (i32, i32) {
    %c0_i32 = arith.constant 0 : i32
    %c0_i32_0 = arith.constant 0 : i32
    %c0_i32_1 = arith.constant 0 : i32
    return %c0_i32, %c0_i32_0 : i32, i32
  }
  func.func @transform_7(%arg0: i32) -> (i32, i32) {
    %c0_i32 = arith.constant 0 : i32
    %c0_i32_0 = arith.constant 0 : i32
    return %arg0, %c0_i32 : i32, i32
  }
}

</mosaic_0001>

<bundles_post_ra>
// kernel: tpu_custom_call.1
= control target key start
LH: loop header
LB: loop body
LE: loop exit
PB: predicated region body
PF: predicated region fallthrough
CT: control target
= control target key end

     0   :  { %s1790_s0 = inlined_call_operand.hbm [shape: bf16[256,128], index: 0, kind: input, shape index: {}]   ;;  %s1791_s1 = inlined_call_operand.hbm [shape: bf16[128,128], index: 1, kind: input, shape index: {}]   ;;  %s1792_s2 = inlined_call_operand.vmem [shape: f32[1,128], index: 2, kind: input, shape index: {}]   ;;  %s1793_s3 = inlined_call_operand.hbm [shape: bf16[128,128], index: 3, kind: input, shape index: {}]   ;;  %s1794_s4 = inlined_call_operand.vmem [shape: f32[1,128], index: 4, kind: input, shape index: {}]   ;;  %s1795_s5 = inlined_call_operand.hbm [shape: bf16[128,128], index: 5, kind: input, shape index: {}]   ;;  %s1796_s6 = inlined_call_operand.vmem [shape: f32[1,128], index: 6, kind: input, shape index: {}]   ;;  %s1797_s7 = inlined_call_operand.hbm [shape: f32[256,128], index: 7, kind: output, shape index: {}]  }
   0x1   :  { %1800 = sst [smem:[#allocation15_spill]] %s1791_s1 }
   0x2   :  { %12 = vsyncpa [#allocation3], 0 }
   0x3   :  { %14 = vsyncpa [#allocation3 + $0x1], 0 }
   0x4   :  { %15 = vsyncpa [#allocation6], 0 }
   0x5   :  { %16 = vsyncpa [#allocation9], 0 }
   0x6   :  { %17 = vsyncpa [#allocation4], 0 }
   0x7   :  { %19 = vsyncpa [#allocation4 + $0x1], 0  ;;  %s1545_s24 = smov 0   ;;  %s1547_s25 = smov 0  }
   0x8   :  { %s1549_s26 = smov 0   ;;  %s1551_s27 = smov 0  }
   0x9 LB: > { %s1566_s28 = sadd.s32 4294967295, %s1496_s27   ;;  %s1012_s29 = sadd.s32 4294967294, %s1496_s27   ;;  %s1496_s27 = sphi %s1551_s27, %s1814_s27   ;;  %s1492_s26 = sphi %s1549_s26, %s1813_s26   ;;  %s1488_s25 = sphi %s1547_s25, %s1812_s25   ;;  %s1484_s24 = sphi %s1545_s24, %s1811_s24  }
   0xa   : > { %p45_p0 = scmp.ne.s32.totalorder %s1488_s25, %s1484_s24  ;;  %p46_p1 = scmp.eq.s32.totalorder %s1566_s28, 0 }
   0xb   : > { %p195_p2 = scmp.eq.s32.totalorder %s1566_s28, 1  ;;  %p201_p3 = scmp.eq.s32.totalorder %s1012_s29, 1 }
   0xc   : > { %p1575_p4 = por %p46_p1, %p45_p0  ;;  %p1013_p5 = scmp.ge.s32.totalorder %s1496_s27, 1 }
   0xd   : > { %p1580_p6 = por %p201_p3, %p45_p0  ;;  %p208_p7 = scmp.lt.s32.totalorder %s1496_s27, 3 }
   0xe   : > { %s1803_s1 = sld [smem:[#allocation15_spill]]  ;;  %s1498_s13 = smov [#allocation5]  }
   0xf   : > { %p1588_p8 = pnand %p1013_p5, %p208_p7  ;;  %s221_s14 = sshll.u32 %s1498_s13, 4  ;;  %s222_s14 = int_to_ptr.vmem [resolvable:$true] %s221_s14 }
  0x10   : > { %s236_s18 = sshll.u32 %s1793_s3, 4  ;;  %s1798_s19 = smov 64   ;;  %s237_s18 = int_to_ptr.hbm [resolvable:$true] %s236_s18 }
  0x11   : > { %p1234_p9 = pneg %p1588_p8  ;;  %s1799_s20 = smov 4  }
  0x12   : > { %s1501_s21 = smov [#allocation7]   ;;  %s253_s9 = sshll.u32 %s1795_s5, 4  ;;  %s254_s9 = int_to_ptr.hbm [resolvable:$true] %s253_s9 }
  0x13   : > { %p1596_p10 = pnand %p1234_p9, %p46_p1  ;;  %s238_s22 = sshll.u32 %s1501_s21, 4  ;;  %s239_s22 = int_to_ptr.vmem [resolvable:$true] %s238_s22 }
  0x14   : > { %s219_s11 = sshll.u32 %s1803_s1, 4  ;;  %s1502_s10 = smov [#allocation8]   ;;  %s220_s11 = int_to_ptr.hbm [resolvable:$true] %s219_s11 }
  0x15   : > { %1237 = dma.hbm_to_vmem [thread:$0]  (!%p1596_p10), %s220_s11, 1024, %s222_s14, [#allocation6], %s1798_s19, %s1798_s19, %s1799_s20  }
  0x16   : > { %1240 = dma.hbm_to_vmem [thread:$0]  (!%p1596_p10), %s237_s18, 1024, %s239_s22, [#allocation6], %s1798_s19, %s1798_s19, %s1799_s20  }
  0x17   : > { %s255_s11 = sshll.u32 %s1502_s10, 4  ;;  %s1618_s13 = sadd.s32 1, %s1496_s27   ;;  %s256_s11 = int_to_ptr.vmem [resolvable:$true] %s255_s11 }
  0x18   : > { %1243 = dma.hbm_to_vmem [thread:$0]  (!%p1596_p10), %s254_s9, 1024, %s256_s11, [#allocation9], %s1798_s19, %s1798_s19, %s1799_s20  }
  0x19   : > { %s29_s14 = ssub.s32 %s1496_s27, %s1618_s13  ;;  %s32_s16 = sadd.s32 1, %s1492_s26 }
  0x1a   : > { %p30_p12 = scmp.eq.s32.totalorder %s29_s14, 0  ;;  %p39_p13 = scmp.ne.s32.totalorder %s1492_s26, %s1488_s25 }
  0x1b   : > { %p40_p0 = scmp.eq.s32.totalorder %s1496_s27, 0  ;;  %p1255_p5 = scmp.lt.s32.totalorder %s1496_s27, 2 }
  0x1c   : > { %s1632_s17 = scalar_select %p30_p12, %s1492_s26, %s32_s16  }
  0x1d   : > { %p1636_p3 = por %p195_p2, %p39_p13  ;;  %s272_s21 = sand.u32 1, %s1492_s26  }
  0x1e   : > { %s1160_s15 = sshll.u32 %s1496_s27, 6  ;;  %p41_p7 = por %p40_p0, %p39_p13 }
  0x1f   : > { %s1018_s22 = sshll.u32 %s272_s21, 6  ;;  %s281_s9 = scalar_lea.hbm %s1790_s0, %s1160_s15 }
  0x20   : > { %s282_s10 = sshll.u32 %s281_s9, 4  ;;  %s276_s11 = scalar_lea.vmem [#allocation2], %s1018_s22  ;;  %s283_s10 = int_to_ptr.hbm [resolvable:$true] %s282_s10 }
  0x21   : > { %s284_s14 = sshll.u32 %s276_s11, 4  ;;  %p1646_p9 = pnand %p1255_p5, %p41_p7  ;;  %s285_s14 = int_to_ptr.vmem [resolvable:$true] %s284_s14 }
  0x22   : > { %s273_s19 = scalar_lea.sflag [#allocation3], %s272_s21  ;;  %s1392_s20 = sshra.s32 %s283_s10, 4  ;;  %s1393_s20 = int_to_ptr.hbm [resolvable:$true] %s1392_s20 }
  0x23   : > { %s1394_s1 = scalar_lea.hbm %s1393_s20, 64  ;;  %p1396_p10 = pneg %p1646_p9 }
  0x24   : > { %p1395_p2 = scmp.ne.s32.totalorder %s1393_s20, %s1394_s1  ;;  %s1399_s22 = scalar_lea.hbm %s1790_s0, 128 }
  0x25   : > { %p1400_p0 = scmp.lt.s32.totalorder %s1393_s20, %s1790_s0  ;;  %p1401_p5 = scmp.lt.s32.totalorder %s1399_s22, %s1394_s1 }
  0x26   : > { %p1397_p12 = pnand %p1396_p10, %p1395_p2 }
  0x27   : > { %p1402_p7 = por %p1401_p5, %p1400_p0 }
  0x28   : > { %p1398_p13 = pneg %p1397_p12 }
  0x2a   : > { %p1403_p11 = pnand %p1402_p7, %p1398_p13 }
  0x2c   : > { %1406 = shalt.err (!%p1403_p11)
}
  0x2d   : > { %s1808_s21 = smov 4   ;;  %s1809_s11 = smov 64  }
  0x2e   : > { %1247 = dma.hbm_to_vmem [thread:$0]  (!%p1646_p9), %s283_s10, 1024, %s285_s14, %s273_s19, %s1809_s11, %s1809_s11, %s1808_s21  }
  0x2f   : > { %296 = sbr.rel (%p1588_p8) target bundleno = 597 (0x255), region = 48  ;;  %s1666_s15 = sand.u32 (!%p1588_p8), 1, %s1488_s25  }
  0x30   : > { %s1022_s20 = sshll.u32 (!%p1588_p8), %s1666_s15, 6  ;;  %s299_s1 = scalar_lea.sflag (!%p1588_p8), [#allocation3], %s1666_s15 }
  0x31   : > { %s1670_s23 = scalar_lea.vmem (!%p1588_p8), [#allocation2], %s1022_s20 }
  0x34   : > { %1467 = dma.done.wait (%p1575_p4), %s299_s1, 1024  }
  0x35   : > { %1469 = vsyncadd (%p1575_p4), %s299_s1, 4294966272 }
  0x36   : > { %1471 = dma.done.wait (%p46_p1), [#allocation6], 2048  }
  0x37   : > { %1473 = vsyncadd (%p46_p1), [#allocation6], 4294965248 }
  0x38   : > { %1475 = dma.done.wait (%p46_p1), [#allocation9], 1024  }
  0x39   : > { %1477 = vsyncadd (%p46_p1), [#allocation9], 4294966272  ;;  %v1176_v0 = vld [vmem:[#allocation5 + $0x38] sm:$0xff]  ;;  %v1175_v1 = vld [vmem:[#allocation5 + $0x30] sm:$0xff]  ;;  %s1026_s14 = sshll.u32 %s1666_s15, 7  ;;  %s1193_s9 = sshll.u32 %s1566_s28, 7 }
  0x3a   : > { %483 = vmatpush.bf16.msra.mxu0 %v1176_v0  ;;  %1194 = vmatpush.bf16.msra.mxu3 %v1176_v0  ;;  %v1174_v2 = vld [vmem:[#allocation5 + $0x28] sm:$0xff]  ;;  %v1173_v3 = vld [vmem:[#allocation5 + $0x20] sm:$0xff]  ;;  %v1172_v4 = vld [vmem:[#allocation5 + $0x18] sm:$0xff]  ;;  %s1738_s29 = scalar_lea.vmem [#allocation10], %s1026_s14  ;;  %s906_s20 = scalar_lea.hbm %s1797_s7, %s1193_s9 }
  0x3b   : > { %v1171_v5 = vld [vmem:[#allocation5 + $0x10] sm:$0xff]  ;;  %v1170_v6 = vld [vmem:[#allocation5 + $0x8] sm:$0xff]  ;;  %v1169_v7 = vld [vmem:[#allocation5] sm:$0xff]  ;;  %s907_s1 = sshll.u32 %s1738_s29, 4  ;;  %s895_s30 = scalar_lea.sflag [#allocation4], %s1666_s15  ;;  %s908_s1 = int_to_ptr.vmem [resolvable:$true] %s907_s1 }
  0x3c   : > { %v1161_v8 = vld [vmem:[%s1670_s23] sm:$0xff]  ;;  %v1167_v9 = vld [vmem:[%s1670_s23 + $0x30] sm:$0xff]  ;;  %v1162_v10 = vld [vmem:[%s1670_s23 + $0x8] sm:$0xff]  ;;  %s1442_s14 = scalar_lea.hbm %s1797_s7, 256 }
  0x3d   : > { %v1168_v11 = vld [vmem:[%s1670_s23 + $0x38] sm:$0xff]  ;;  %v1163_v12 = vld [vmem:[%s1670_s23 + $0x10] sm:$0xff]  ;;  %v1182_v16 = vld [vmem:[#allocation7 + $0x28] sm:$0xff] }
  0x3e   : > { %484 = vmatpush.bf16.msra.mxu0 %v1175_v1  ;;  %1195 = vmatpush.bf16.msra.mxu3 %v1175_v1  ;;  %v1164_v13 = vld [vmem:[%s1670_s23 + $0x18] sm:$0xff]  ;;  %v1183_v15 = vld [vmem:[#allocation7 + $0x30] sm:$0xff]  ;;  %v1181_v17 = vld [vmem:[#allocation7 + $0x20] sm:$0xff] }
  0x3f   : > { %v1184_v14 = vld [vmem:[#allocation7 + $0x38] sm:$0xff]  ;;  %v1165_v18 = vld [vmem:[%s1670_s23 + $0x20] sm:$0xff]  ;;  %v1166_v19 = vld [vmem:[%s1670_s23 + $0x28] sm:$0xff]  ;;  %s909_s23 = sshll.u32 %s906_s20, 4  ;;  %s910_s23 = int_to_ptr.hbm [resolvable:$true] %s909_s23 }
  0x40   : > { %656 = vmatpush.bf16.msra.mxu1 %v1184_v14  ;;  %v1180_v20 = vld [vmem:[#allocation7 + $0x18] sm:$0xff]  ;;  %v1179_v21 = vld [vmem:[#allocation7 + $0x10] sm:$0xff]  ;;  %v1178_v22 = vld [vmem:[#allocation7 + $0x8] sm:$0xff]  ;;  %s1436_s12 = sshra.s32 %s910_s23, 4  ;;  %s1437_s12 = int_to_ptr.hbm [resolvable:$true] %s1436_s12 }
  0x41   : > { %v1177_v23 = vld [vmem:[#allocation7] sm:$0xff]  ;;  %s1438_s19 = scalar_lea.hbm %s1437_s12, 128  ;;  %p1443_p11 = scmp.lt.s32.totalorder %s1437_s12, %s1797_s7 }
  0x42   : > { %485 = vmatpush.bf16.msra.mxu0 %v1174_v2  ;;  %1196 = vmatpush.bf16.msra.mxu3 %v1174_v2  ;;  %v1695_v25 = vld [vmem:[%s1792_s2] ss:$0 sm:$0xff]  ;;  %p1439_p1 = scmp.ne.s32.totalorder %s1437_s12, %s1438_s19  ;;  %p1444_p9 = scmp.lt.s32.totalorder %s1442_s14, %s1438_s19 }
  0x44   : > { %657 = vmatpush.bf16.msra.mxu1 %v1183_v15  ;;  %p1440_p4 = pnand %p1439_p1, %p1636_p3  ;;  %p1445_p2 = por %p1444_p9, %p1443_p11 }
  0x46   : > { %486 = vmatpush.bf16.msra.mxu0 %v1173_v3  ;;  %1197 = vmatpush.bf16.msra.mxu3 %v1173_v3  ;;  %p1441_p8 = pneg %p1440_p4 }
  0x48   : > { %658 = vmatpush.bf16.msra.mxu1 %v1182_v16  ;;  %p1446_p10 = pnand %p1445_p2, %p1441_p8 }
  0x4a   : > { %487 = vmatpush.bf16.msra.mxu0 %v1172_v4  ;;  %1198 = vmatpush.bf16.msra.mxu3 %v1172_v4 }
  0x4c   : > { %659 = vmatpush.bf16.msra.mxu1 %v1181_v17 }
  0x4e   : > { %488 = vmatpush.bf16.msra.mxu0 %v1171_v5  ;;  %1199 = vmatpush.bf16.msra.mxu3 %v1171_v5 }
  0x50   : > { %660 = vmatpush.bf16.msra.mxu1 %v1180_v20 }
  0x52   : > { %489 = vmatpush.bf16.msra.mxu0 %v1170_v6  ;;  %1200 = vmatpush.bf16.msra.mxu3 %v1170_v6 }
  0x54   : > { %661 = vmatpush.bf16.msra.mxu1 %v1179_v21 }
  0x56   : > { %490 = vmatpush.bf16.msra.mxu0 %v1169_v7  ;;  %1201 = vmatpush.bf16.msra.mxu3 %v1169_v7 }
  0x58   : > { %662 = vmatpush.bf16.msra.mxu1 %v1178_v22 }
  0x59   : > { %491 = vmatmul.bf16.vlgmr.msra.gmra.mxu0 %v1161_v8  ;;  %521 = vmatmul.bf16.vlgmr.msra.gmra.mxu3 %v1167_v9 }
  0x5a   : > { %1202 = vmatpush.bf16.msrb.mxu3 %v1184_v14 }
  0x5c   : > { %663 = vmatpush.bf16.msra.mxu1 %v1177_v23 }
  0x5e   : > { %1203 = vmatpush.bf16.msrb.mxu3 %v1183_v15 }
  0x62   : > { %1204 = vmatpush.bf16.msrb.mxu3 %v1182_v16  ;;  %v1192_v16 = vld [vmem:[#allocation8 + $0x38] sm:$0xff] }
  0x63   : > { %829 = vmatpush.bf16.msra.mxu2 %v1192_v16 }
  0x66   : > { %1205 = vmatpush.bf16.msrb.mxu3 %v1181_v17  ;;  %v1191_v17 = vld [vmem:[#allocation8 + $0x30] sm:$0xff] }
  0x67   : > { %830 = vmatpush.bf16.msra.mxu2 %v1191_v17 }
  0x69   : > { %496 = vmatmul.bf16.gmra.mxu0 %v1162_v10  ;;  %526 = vmatmul.bf16.gmra.mxu3 %v1168_v11 }
  0x6a   : > { %1206 = vmatpush.bf16.msrb.mxu3 %v1180_v20 }
  0x6e   : > { %1207 = vmatpush.bf16.msrb.mxu3 %v1179_v21 }
  0x72   : > { %1208 = vmatpush.bf16.msrb.mxu3 %v1178_v22 }
  0x76   : > { %1209 = vmatpush.bf16.msrb.mxu3 %v1177_v23  ;;  %v1189_v23 = vld [vmem:[#allocation8 + $0x20] sm:$0xff] }
  0x79   : > { %501 = vmatmul.bf16.gmra.mxu0 %v1163_v12 }
  0x7a   : > { %1210 = vmatpush.bf16.msra.mxu3 %v1192_v16 }
  0x7e   : > { %1211 = vmatpush.bf16.msra.mxu3 %v1191_v17 }
  0x89   : > { %506 = vmatmul.bf16.gmra.mxu0 %v1164_v13 }
  0x99   : > { %511 = vmatmul.bf16.gmra.mxu0 %v1165_v18 }
  0xa9   : > { %516 = vmatmul.bf16.gmra.mxu0 %v1166_v19  ;;  %v1190_v19 = vld [vmem:[#allocation8 + $0x28] sm:$0xff] }
  0xaa   : > { %831 = vmatpush.bf16.msra.mxu2 %v1190_v19  ;;  %1212 = vmatpush.bf16.msra.mxu3 %v1190_v19 }
  0xae   : > { %832 = vmatpush.bf16.msra.mxu2 %v1189_v23  ;;  %1213 = vmatpush.bf16.msra.mxu3 %v1189_v23 }
  0xd6   : > { %v492_v24 = vpop.f32.mrf.mxu0 }
  0xd7   : > { %v493_v26 = vadd.f32 %v1695_v25, %v492_v24 }
  0xd9   : > { %v548_v29 = vmul.f32 0.01, %v493_v26  ;;  %vm532_vm0 = vcmp.ge.f32.partialorder %v493_v26, 0.0 }
  0xdb   : > { %v564_v33 = vsel %vm532_vm0, %v493_v26, %v548_v29 }
  0xdc   : > { %v522_v27 = vpop.f32.mrf.mxu3 }
  0xdd   : > { %v523_v31 = vadd.f32 %v1695_v25, %v522_v27 }
  0xde   : > { %v494_v28 = vpop.f32.mrf.mxu0 }
  0xdf   : > { %v495_v30 = vadd.f32 %v1695_v25, %v494_v28  ;;  %v560_v35 = vmul.f32 0.01, %v523_v31  ;;  %vm544_vm2 = vcmp.ge.f32.partialorder %v523_v31, 0.0 }
  0xe1   : > { %v549_v32 = vmul.f32 0.01, %v495_v30  ;;  %vm533_vm1 = vcmp.ge.f32.partialorder %v495_v30, 0.0  ;;  %v576_v41 = vsel %vm544_vm2, %v523_v31, %v560_v35 }
  0xe3   : > { %v565_v34 = vsel %vm533_vm1, %v495_v30, %v549_v32 }
  0xe4   : > { %v597_v36 = vpack.c.bf16 %v565_v34, %v564_v33  ;;  %v524_v37 = vpop.f32.mrf.mxu3 }
  0xe5   : > { %v525_v38 = vadd.f32 %v1695_v25, %v524_v37 }
  0xe6   : > { %v497_v39 = vpop.f32.mrf.mxu0  ;;  %664 = vmatmul.bf16.vlgmr.msra.gmra.mxu1 %v597_v36 }
  0xe7   : > { %vm545_vm3 = vcmp.ge.f32.partialorder %v525_v38, 0.0  ;;  %v561_v40 = vmul.f32 0.01, %v525_v38  ;;  %v498_v44 = vadd.f32 %v1695_v25, %v497_v39  ;;  %v1187_v39 = vld [vmem:[#allocation8 + $0x10] sm:$0xff] }
  0xe9   : > { %v577_v42 = vsel %vm545_vm3, %v525_v38, %v561_v40  ;;  %v550_v47 = vmul.f32 0.01, %v498_v44  ;;  %vm534_vm4 = vcmp.ge.f32.partialorder %v498_v44, 0.0  ;;  %v1188_v38 = vld [vmem:[#allocation8 + $0x18] sm:$0xff]  ;;  %v1186_v40 = vld [vmem:[#allocation8 + $0x8] sm:$0xff] }
  0xea   : > { %v603_v43 = vpack.c.bf16 %v577_v42, %v576_v41  ;;  %833 = vmatpush.bf16.msra.mxu2 %v1188_v38  ;;  %1214 = vmatpush.bf16.msra.mxu3 %v1188_v38  ;;  %v1185_v41 = vld [vmem:[#allocation8] sm:$0xff] }
  0xeb   : > { %v566_v51 = vsel %vm534_vm4, %v498_v44, %v550_v47  ;;  %v1716_v42 = vld [vmem:[%s1794_s4] ss:$0 sm:$0xff] }
  0xec   : > { %v527_v45 = vpop.f32.mrf.mxu3  ;;  %694 = vmatmul.bf16.vlgmr.msrb.gmra.mxu3 %v603_v43 }
  0xed   : > { %v528_v49 = vadd.f32 %v1695_v25, %v527_v45 }
  0xee   : > { %v499_v46 = vpop.f32.mrf.mxu0  ;;  %834 = vmatpush.bf16.msra.mxu2 %v1187_v39  ;;  %1215 = vmatpush.bf16.msra.mxu3 %v1187_v39 }
  0xef   : > { %v500_v48 = vadd.f32 %v1695_v25, %v499_v46  ;;  %v562_v53 = vmul.f32 0.01, %v528_v49  ;;  %vm546_vm6 = vcmp.ge.f32.partialorder %v528_v49, 0.0 }
  0xf1   : > { %v551_v50 = vmul.f32 0.01, %v500_v48  ;;  %vm535_vm5 = vcmp.ge.f32.partialorder %v500_v48, 0.0  ;;  %v578_v59 = vsel %vm546_vm6, %v528_v49, %v562_v53 }
  0xf2   : > { %835 = vmatpush.bf16.msra.mxu2 %v1186_v40  ;;  %1216 = vmatpush.bf16.msra.mxu3 %v1186_v40 }
  0xf3   : > { %v567_v52 = vsel %vm535_vm5, %v500_v48, %v551_v50 }
  0xf4   : > { %v598_v54 = vpack.c.bf16 %v567_v52, %v566_v51  ;;  %v529_v55 = vpop.f32.mrf.mxu3 }
  0xf5   : > { %v530_v56 = vadd.f32 %v1695_v25, %v529_v55 }
  0xf6   : > { %v502_v57 = vpop.f32.mrf.mxu0  ;;  %669 = vmatmul.bf16.gmra.mxu1 %v598_v54  ;;  %836 = vmatpush.bf16.msra.mxu2 %v1185_v41 }
  0xf7   : > { %v563_v58 = vmul.f32 0.01, %v530_v56  ;;  %vm547_vm7 = vcmp.ge.f32.partialorder %v530_v56, 0.0  ;;  %v503_v62 = vadd.f32 %v1695_v25, %v502_v57  ;;  %1217 = vmatpush.bf16.msra.mxu3 %v1185_v41 }
  0xf9   : > { %v579_v60 = vsel %vm547_vm7, %v530_v56, %v563_v58  ;;  %v552_v0 = vmul.f32 0.01, %v503_v62  ;;  %vm536_vm8 = vcmp.ge.f32.partialorder %v503_v62, 0.0 }
  0xfa   : > { %v604_v61 = vpack.c.bf16 %v579_v60, %v578_v59 }
  0xfb   : > { %v568_v3 = vsel %vm536_vm8, %v503_v62, %v552_v0 }
  0xfc   : > { %699 = vmatmul.bf16.gmra.mxu3 %v604_v61 }
  0xfe   : > { %v504_v63 = vpop.f32.mrf.mxu0 }
  0xff   : > { %v505_v1 = vadd.f32 %v1695_v25, %v504_v63 }
 0x101   : > { %v553_v2 = vmul.f32 0.01, %v505_v1  ;;  %vm537_vm9 = vcmp.ge.f32.partialorder %v505_v1, 0.0 }
 0x103   : > { %v569_v4 = vsel %vm537_vm9, %v505_v1, %v553_v2 }
 0x104   : > { %v599_v5 = vpack.c.bf16 %v569_v4, %v568_v3 }
 0x106   : > { %v507_v6 = vpop.f32.mrf.mxu0  ;;  %674 = vmatmul.bf16.gmra.mxu1 %v599_v5 }
 0x107   : > { %v508_v7 = vadd.f32 %v1695_v25, %v507_v6 }
 0x109   : > { %v554_v9 = vmul.f32 0.01, %v508_v7  ;;  %vm538_vm10 = vcmp.ge.f32.partialorder %v508_v7, 0.0 }
 0x10b   : > { %v570_v12 = vsel %vm538_vm10, %v508_v7, %v554_v9 }
 0x10e   : > { %v509_v8 = vpop.f32.mrf.mxu0 }
 0x10f   : > { %v510_v10 = vadd.f32 %v1695_v25, %v509_v8 }
 0x111   : > { %v555_v11 = vmul.f32 0.01, %v510_v10  ;;  %vm539_vm11 = vcmp.ge.f32.partialorder %v510_v10, 0.0 }
 0x113   : > { %v571_v13 = vsel %vm539_vm11, %v510_v10, %v555_v11 }
 0x114   : > { %v600_v14 = vpack.c.bf16 %v571_v13, %v570_v12 }
 0x116   : > { %v512_v15 = vpop.f32.mrf.mxu0  ;;  %679 = vmatmul.bf16.gmra.mxu1 %v600_v14 }
 0x117   : > { %v513_v18 = vadd.f32 %v1695_v25, %v512_v15 }
 0x119   : > { %v556_v21 = vmul.f32 0.01, %v513_v18  ;;  %vm540_vm12 = vcmp.ge.f32.partialorder %v513_v18, 0.0 }
 0x11b   : > { %v572_v26 = vsel %vm540_vm12, %v513_v18, %v556_v21 }
 0x11e   : > { %v514_v20 = vpop.f32.mrf.mxu0 }
 0x11f   : > { %v515_v22 = vadd.f32 %v1695_v25, %v514_v20 }
 0x121   : > { %v557_v24 = vmul.f32 0.01, %v515_v22  ;;  %vm541_vm13 = vcmp.ge.f32.partialorder %v515_v22, 0.0 }
 0x123   : > { %v573_v27 = vsel %vm541_vm13, %v515_v22, %v557_v24 }
 0x124   : > { %v601_v28 = vpack.c.bf16 %v573_v27, %v572_v26 }
 0x126   : > { %v517_v29 = vpop.f32.mrf.mxu0  ;;  %684 = vmatmul.bf16.gmra.mxu1 %v601_v28 }
 0x127   : > { %v518_v30 = vadd.f32 %v1695_v25, %v517_v29 }
 0x129   : > { %v558_v32 = vmul.f32 0.01, %v518_v30  ;;  %vm542_vm14 = vcmp.ge.f32.partialorder %v518_v30, 0.0 }
 0x12b   : > { %v574_v35 = vsel %vm542_vm14, %v518_v30, %v558_v32 }
 0x12e   : > { %v519_v31 = vpop.f32.mrf.mxu0 }
 0x12f   : > { %v520_v33 = vadd.f32 %v1695_v25, %v519_v31 }
 0x131   : > { %v559_v34 = vmul.f32 0.01, %v520_v33  ;;  %vm543_vm15 = vcmp.ge.f32.partialorder %v520_v33, 0.0 }
 0x133   : > { %v575_v36 = vsel %vm543_vm15, %v520_v33, %v559_v34 }
 0x134   : > { %v602_v37 = vpack.c.bf16 %v575_v36, %v574_v35 }
 0x136   : > { %689 = vmatmul.bf16.gmra.mxu1 %v602_v37 }
 0x163   : > { %v665_v25 = vpop.f32.mrf.mxu1 }
 0x164   : > { %v666_v43 = vadd.f32 %v1716_v42, %v665_v25 }
 0x166   : > { %v721_v45 = vmul.f32 0.01, %v666_v43  ;;  %vm705_vm0 = vcmp.ge.f32.partialorder %v666_v43, 0.0 }
 0x168   : > { %v737_v49 = vsel %vm705_vm0, %v666_v43, %v721_v45 }
 0x16b   : > { %v667_v44 = vpop.f32.mrf.mxu1 }
 0x16c   : > { %v668_v46 = vadd.f32 %v1716_v42, %v667_v44 }
 0x16e   : > { %v722_v47 = vmul.f32 0.01, %v668_v46  ;;  %vm706_vm1 = vcmp.ge.f32.partialorder %v668_v46, 0.0 }
 0x16f   : > { %v695_v48 = vpop.f32.mrf.mxu3 }
 0x170   : > { %v738_v50 = vsel %vm706_vm1, %v668_v46, %v722_v47  ;;  %v696_v52 = vadd.f32 %v1716_v42, %v695_v48 }
 0x171   : > { %v770_v51 = vpack.c.bf16 %v738_v50, %v737_v49 }
 0x172   : > { %v733_v54 = vmul.f32 0.01, %v696_v52  ;;  %vm717_vm2 = vcmp.ge.f32.partialorder %v696_v52, 0.0 }
 0x173   : > { %v670_v53 = vpop.f32.mrf.mxu1  ;;  %837 = vmatmul.bf16.vlgmr.msra.gmra.mxu2 %v770_v51  ;;  %v1301_v51 = vld [vmem:[%s1796_s6] ss:$0 sm:$0xff] }
 0x174   : > { %v671_v56 = vadd.f32 %v1716_v42, %v670_v53  ;;  %v749_v58 = vsel %vm717_vm2, %v696_v52, %v733_v54 }
 0x176   : > { %v723_v61 = vmul.f32 0.01, %v671_v56  ;;  %vm707_vm4 = vcmp.ge.f32.partialorder %v671_v56, 0.0 }
 0x177   : > { %v697_v55 = vpop.f32.mrf.mxu3 }
 0x178   : > { %v698_v57 = vadd.f32 %v1716_v42, %v697_v55  ;;  %v739_v3 = vsel %vm707_vm4, %v671_v56, %v723_v61 }
 0x17a   : > { %vm718_vm3 = vcmp.ge.f32.partialorder %v698_v57, 0.0  ;;  %v734_v59 = vmul.f32 0.01, %v698_v57 }
 0x17b   : > { %v672_v60 = vpop.f32.mrf.mxu1 }
 0x17c   : > { %v673_v62 = vadd.f32 %v1716_v42, %v672_v60  ;;  %v750_v63 = vsel %vm718_vm3, %v698_v57, %v734_v59 }
 0x17d   : > { %v776_v0 = vpack.c.bf16 %v750_v63, %v749_v58 }
 0x17e   : > { %v724_v1 = vmul.f32 0.01, %v673_v62  ;;  %vm708_vm5 = vcmp.ge.f32.partialorder %v673_v62, 0.0 }
 0x17f   : > { %v700_v2 = vpop.f32.mrf.mxu3  ;;  %867 = vmatmul.bf16.vlgmr.msra.gmra.mxu3 %v776_v0 }
 0x180   : > { %v740_v4 = vsel %vm708_vm5, %v673_v62, %v724_v1  ;;  %v701_v6 = vadd.f32 %v1716_v42, %v700_v2 }
 0x181   : > { %v771_v5 = vpack.c.bf16 %v740_v4, %v739_v3 }
 0x182   : > { %v735_v8 = vmul.f32 0.01, %v701_v6  ;;  %vm719_vm6 = vcmp.ge.f32.partialorder %v701_v6, 0.0 }
 0x183   : > { %v675_v7 = vpop.f32.mrf.mxu1  ;;  %842 = vmatmul.bf16.gmra.mxu2 %v771_v5 }
 0x184   : > { %v676_v10 = vadd.f32 %v1716_v42, %v675_v7  ;;  %v751_v13 = vsel %vm719_vm6, %v701_v6, %v735_v8 }
 0x186   : > { %v725_v15 = vmul.f32 0.01, %v676_v10  ;;  %vm709_vm8 = vcmp.ge.f32.partialorder %v676_v10, 0.0 }
 0x187   : > { %v702_v9 = vpop.f32.mrf.mxu3 }
 0x188   : > { %v703_v11 = vadd.f32 %v1716_v42, %v702_v9  ;;  %v741_v20 = vsel %vm709_vm8, %v676_v10, %v725_v15 }
 0x18a   : > { %v736_v12 = vmul.f32 0.01, %v703_v11  ;;  %vm720_vm7 = vcmp.ge.f32.partialorder %v703_v11, 0.0 }
 0x18b   : > { %v677_v14 = vpop.f32.mrf.mxu1 }
 0x18c   : > { %v678_v16 = vadd.f32 %v1716_v42, %v677_v14  ;;  %v752_v17 = vsel %vm720_vm7, %v703_v11, %v736_v12 }
 0x18d   : > { %v777_v18 = vpack.c.bf16 %v752_v17, %v751_v13 }
 0x18e   : > { %v726_v19 = vmul.f32 0.01, %v678_v16  ;;  %vm710_vm9 = vcmp.ge.f32.partialorder %v678_v16, 0.0 }
 0x18f   : > { %872 = vmatmul.bf16.gmra.mxu3 %v777_v18 }
 0x190   : > { %v742_v21 = vsel %vm710_vm9, %v678_v16, %v726_v19 }
 0x191   : > { %v772_v22 = vpack.c.bf16 %v742_v21, %v741_v20 }
 0x193   : > { %v680_v23 = vpop.f32.mrf.mxu1  ;;  %847 = vmatmul.bf16.gmra.mxu2 %v772_v22 }
 0x194   : > { %v681_v24 = vadd.f32 %v1716_v42, %v680_v23 }
 0x196   : > { %v727_v27 = vmul.f32 0.01, %v681_v24  ;;  %vm711_vm10 = vcmp.ge.f32.partialorder %v681_v24, 0.0 }
 0x198   : > { %v743_v30 = vsel %vm711_vm10, %v681_v24, %v727_v27 }
 0x19b   : > { %v682_v26 = vpop.f32.mrf.mxu1 }
 0x19c   : > { %v683_v28 = vadd.f32 %v1716_v42, %v682_v26 }
 0x19e   : > { %v728_v29 = vmul.f32 0.01, %v683_v28  ;;  %vm712_vm11 = vcmp.ge.f32.partialorder %v683_v28, 0.0 }
 0x1a0   : > { %v744_v31 = vsel %vm712_vm11, %v683_v28, %v728_v29 }
 0x1a1   : > { %v773_v32 = vpack.c.bf16 %v744_v31, %v743_v30 }
 0x1a3   : > { %v685_v33 = vpop.f32.mrf.mxu1  ;;  %852 = vmatmul.bf16.gmra.mxu2 %v773_v32 }
 0x1a4   : > { %v686_v34 = vadd.f32 %v1716_v42, %v685_v33 }
 0x1a6   : > { %v729_v36 = vmul.f32 0.01, %v686_v34  ;;  %vm713_vm12 = vcmp.ge.f32.partialorder %v686_v34, 0.0 }
 0x1a8   : > { %v745_v39 = vsel %vm713_vm12, %v686_v34, %v729_v36 }
 0x1ab   : > { %v687_v35 = vpop.f32.mrf.mxu1 }
 0x1ac   : > { %v688_v37 = vadd.f32 %v1716_v42, %v687_v35 }
 0x1ae   : > { %v730_v38 = vmul.f32 0.01, %v688_v37  ;;  %vm714_vm13 = vcmp.ge.f32.partialorder %v688_v37, 0.0 }
 0x1b0   : > { %v746_v40 = vsel %vm714_vm13, %v688_v37, %v730_v38 }
 0x1b1   : > { %v774_v41 = vpack.c.bf16 %v746_v40, %v745_v39 }
 0x1b3   : > { %v690_v25 = vpop.f32.mrf.mxu1  ;;  %857 = vmatmul.bf16.gmra.mxu2 %v774_v41 }
 0x1b4   : > { %v691_v43 = vadd.f32 %v1716_v42, %v690_v25 }
 0x1b6   : > { %v731_v45 = vmul.f32 0.01, %v691_v43  ;;  %vm715_vm14 = vcmp.ge.f32.partialorder %v691_v43, 0.0 }
 0x1b8   : > { %v747_v48 = vsel %vm715_vm14, %v691_v43, %v731_v45 }
 0x1bb   : > { %v692_v44 = vpop.f32.mrf.mxu1 }
 0x1bc   : > { %v693_v46 = vadd.f32 %v1716_v42, %v692_v44 }
 0x1be   : > { %v732_v47 = vmul.f32 0.01, %v693_v46  ;;  %vm716_vm15 = vcmp.ge.f32.partialorder %v693_v46, 0.0 }
 0x1c0   : > { %v748_v49 = vsel %vm716_vm15, %v693_v46, %v732_v47 }
 0x1c1   : > { %v775_v50 = vpack.c.bf16 %v748_v49, %v747_v48 }
 0x1c3   : > { %862 = vmatmul.bf16.gmra.mxu2 %v775_v50 }
 0x1f6   : > { %v838_v52 = vpop.f32.mrf.mxu2 }
 0x1f7   : > { %v839_v53 = vadd.f32 %v1301_v51, %v838_v52 }
 0x1f9   : > { %878 = vst [vmem:[%s1738_s29] sm:$0xff] %v839_v53 }
 0x1fe   : > { %v840_v42 = vpop.f32.mrf.mxu2 }
 0x1ff   : > { %v841_v54 = vadd.f32 %v1301_v51, %v840_v42 }
 0x201   : > { %879 = vst [vmem:[%s1738_s29 + $0x8] sm:$0xff] %v841_v54 }
 0x202   : > { %v868_v55 = vpop.f32.mrf.mxu3 }
 0x203   : > { %v869_v56 = vadd.f32 %v1301_v51, %v868_v55 }
 0x205   : > { %890 = vst [vmem:[%s1738_s29 + $0x60] sm:$0xff] %v869_v56 }
 0x206   : > { %v843_v57 = vpop.f32.mrf.mxu2 }
 0x207   : > { %v844_v58 = vadd.f32 %v1301_v51, %v843_v57 }
 0x209   : > { %880 = vst [vmem:[%s1738_s29 + $0x10] sm:$0xff] %v844_v58 }
 0x20a   : > { %v870_v59 = vpop.f32.mrf.mxu3 }
 0x20b   : > { %v871_v60 = vadd.f32 %v1301_v51, %v870_v59 }
 0x20d   : > { %891 = vst [vmem:[%s1738_s29 + $0x68] sm:$0xff] %v871_v60 }
 0x20e   : > { %v845_v61 = vpop.f32.mrf.mxu2 }
 0x20f   : > { %v846_v62 = vadd.f32 %v1301_v51, %v845_v61 }
 0x211   : > { %881 = vst [vmem:[%s1738_s29 + $0x18] sm:$0xff] %v846_v62 }
 0x212   : > { %v873_v63 = vpop.f32.mrf.mxu3 }
 0x213   : > { %v874_v0 = vadd.f32 %v1301_v51, %v873_v63 }
 0x215   : > { %892 = vst [vmem:[%s1738_s29 + $0x70] sm:$0xff] %v874_v0 }
 0x216   : > { %v848_v1 = vpop.f32.mrf.mxu2 }
 0x217   : > { %v849_v2 = vadd.f32 %v1301_v51, %v848_v1 }
 0x219   : > { %882 = vst [vmem:[%s1738_s29 + $0x20] sm:$0xff] %v849_v2 }
 0x21a   : > { %v875_v3 = vpop.f32.mrf.mxu3 }
 0x21b   : > { %v876_v4 = vadd.f32 %v1301_v51, %v875_v3 }
 0x21d   : > { %893 = vst [vmem:[%s1738_s29 + $0x78] sm:$0xff] %v876_v4 }
 0x21e   : > { %v850_v5 = vpop.f32.mrf.mxu2 }
 0x21f   : > { %v851_v6 = vadd.f32 %v1301_v51, %v850_v5 }
 0x221   : > { %883 = vst [vmem:[%s1738_s29 + $0x28] sm:$0xff] %v851_v6 }
 0x226   : > { %v853_v7 = vpop.f32.mrf.mxu2 }
 0x227   : > { %v854_v8 = vadd.f32 %v1301_v51, %v853_v7 }
 0x229   : > { %884 = vst [vmem:[%s1738_s29 + $0x30] sm:$0xff] %v854_v8 }
 0x22e   : > { %v855_v9 = vpop.f32.mrf.mxu2 }
 0x22f   : > { %v856_v10 = vadd.f32 %v1301_v51, %v855_v9 }
 0x231   : > { %885 = vst [vmem:[%s1738_s29 + $0x38] sm:$0xff] %v856_v10 }
 0x236   : > { %v858_v11 = vpop.f32.mrf.mxu2 }
 0x237   : > { %v859_v12 = vadd.f32 %v1301_v51, %v858_v11 }
 0x239   : > { %886 = vst [vmem:[%s1738_s29 + $0x40] sm:$0xff] %v859_v12 }
 0x23e   : > { %v860_v13 = vpop.f32.mrf.mxu2 }
 0x23f   : > { %v861_v14 = vadd.f32 %v1301_v51, %v860_v13 }
 0x241   : > { %887 = vst [vmem:[%s1738_s29 + $0x48] sm:$0xff] %v861_v14 }
 0x246   : > { %v863_v15 = vpop.f32.mrf.mxu2 }
 0x247   : > { %v864_v16 = vadd.f32 %v1301_v51, %v863_v15 }
 0x249   : > { %888 = vst [vmem:[%s1738_s29 + $0x50] sm:$0xff] %v864_v16 }
 0x24e   : > { %v865_v17 = vpop.f32.mrf.mxu2 }
 0x24f   : > { %v866_v18 = vadd.f32 %v1301_v51, %v865_v17 }
 0x251   : > { %889 = vst [vmem:[%s1738_s29 + $0x58] sm:$0xff] %v866_v18 }
 0x252   : > { %1449 = shalt.err (!%p1446_p10)
}
 0x253   : > { %s1503_s15 = smov 128   ;;  %s1504_s29 = smov 8  }
 0x254   : > { %1232 = dma.vmem_to_hbm [thread:$0]  (%p1636_p3), %s908_s1, 2048, %s910_s23, %s895_s30, %s1503_s15, %s1503_s15, %s1504_s29  }
 0x255 PF: > { %s924_s9 = sand.u32 1, %s1484_s24   ;;  %p1810_p12 = scmp.ge.s32.totalorder %s1496_s27, 2 }
 0x256   : > { %s925_s21 = scalar_lea.sflag [#allocation4], %s924_s9 }
 0x257   : > { %p1249_p13 = pnand %p1810_p12, %p1580_p6 }
 0x259   : > { %p1250_p0 = pneg %p1249_p13 }
 0x25b   : > { %1479 = dma.done.wait (%p1250_p0), %s925_s21, 2048  }
 0x25c   : > { %1481 = vsyncadd (%p1250_p0), %s925_s21, 4294965248  ;;  %p22_p5 = scmp.ge.s32.totalorder %s1618_s13, 4   ;;  %s1811_s24 = smov %s1488_s25 }
 0x25d   : > { %s1812_s25 = smov %s1492_s26  ;;  %s1813_s26 = smov %s1632_s17 }
 0x25e   : > { %s1814_s27 = smov %s1618_s13  ;;  %24 = sbr.rel (!%p22_p5) target bundleno = 9 (0x9), region = 105 }
 0x263   :  { %931 = vsyncpa [#allocation3], 1 }
 0x264   :  { %933 = vsyncpa [#allocation3 + $0x1], 1 }
 0x265   :  { %934 = vsyncpa [#allocation6], 1 }
 0x266   :  { %935 = vsyncpa [#allocation9], 1 }
 0x267   :  { %936 = vsyncpa [#allocation4], 1 }
 0x268   :  { %938 = vsyncpa [#allocation4 + $0x1], 1 }

</bundles_post_ra>
